<compile_context>
chip_gen: v6e
topology: v6e:2x2x1
jax: 0.10.0
libtpu: 0.0.40
codegen_flags: <defaults>
</compile_context>

<pallas_src>
import functools

import jax
import jax.numpy as jnp
from jax.experimental import pallas as pl
from jax.experimental.pallas import tpu as pltpu

ALPHA = 0.25
GAMMA = 2
IGNORE_INDEX = 255.0  # compared against float labels, as in the PyTorch module

_LANES = 128
_SUBLANES = 8
_CHUNK_ROWS = 512        # in-kernel sub-chunk (bounds VMEM temporaries / vregs)
_MAX_TILE_ROWS = 8192    # 8 MiB f32 inputs per grid step (x2 double-buffered)
_NUM_SLICES = 2          # leading "parallel" axis -> both TensorCores on v7x


def _round_up(x, m):
    return ((x + m - 1) // m) * m


def _focal_partial_kernel(preds_ref, labels_ref, sum_ref, cnt_ref, *,
                          rows, tiles_per_slice, tile_rows, chunk_rows,
                          ignore_index):
    s = pl.program_id(0)
    t = pl.program_id(1)  # reduction (tile) axis

    @pl.when(t == 0)
    def _init():
        sum_ref[...] = jnp.zeros_like(sum_ref)
        cnt_ref[...] = jnp.zeros_like(cnt_ref)

    # Logical (UNCLAMPED) global row offset of this grid step.  The input
    # index_map clamps the block index, so duplicate / out-of-range steps
    # re-read the last real block but mask everything to zero here.
    block_row0 = (s * tiles_per_slice + t) * tile_rows
    num_chunks = tile_rows // chunk_rows

    def chunk_body(c, carry):
        acc_s, acc_c = carry
        r0 = pl.multiple_of(c * chunk_rows, chunk_rows)
        x = preds_ref[pl.ds(r0, chunk_rows), :].astype(jnp.float32)
        y = labels_ref[pl.ds(r0, chunk_rows), :].astype(jnp.float32)

        # Row-index tail mask (handles partial boundary blocks / duplicate
        # clamped steps) combined with the ignore_index label mask.
        row_ids = (jax.lax.broadcasted_iota(jnp.int32, (chunk_rows, 1), 0)
                   + (block_row0 + r0))
        valid = (row_ids < rows) & (y != jnp.float32(ignore_index))

        # Numerically stable BCE-with-logits per element:
        #   bce = max(x, 0) - x*y + log1p(exp(-|x|))
        bce = jnp.maximum(x, 0.0) - x * y + jnp.log1p(jnp.exp(-jnp.abs(x)))
        # where (select) keeps OOB garbage (inf/nan) out of the sum safely.
        bce = jnp.where(valid, bce, 0.0)
        cnt = valid.astype(jnp.float32)

        # Reduce the chunk to a vreg-shaped (8, 128) partial with plain VPU
        # adds (no cross-lane XLU work).
        acc_s = acc_s + bce.reshape(-1, _SUBLANES, _LANES).sum(axis=0)
        acc_c = acc_c + cnt.reshape(-1, _SUBLANES, _LANES).sum(axis=0)
        return acc_s, acc_c

    zeros = jnp.zeros((_SUBLANES, _LANES), jnp.float32)
    acc_s, acc_c = jax.lax.fori_loop(0, num_chunks, chunk_body, (zeros, zeros),
                                     unroll=True)
    sum_ref[...] += acc_s
    cnt_ref[...] += acc_c


def focal_loss(preds, labels, alpha=ALPHA, gamma=GAMMA, ignore_index=IGNORE_INDEX):
    """preds, labels: arrays of identical shape (e.g. NCHW). Returns scalar loss.

    Labels may be soft (any float); `ignore_index` entries are excluded from
    the masked-mean BCE, matching the PyTorch module.
    """
    # TODO(synk): per-element `weight` tensor of BCEWithLogitsLoss not implemented
    # (module default weight=None is what is reproduced here).
    n = preds.size
    p = preds.reshape(-1)
    l = labels.reshape(-1)

    # Keep original floating dtypes (streamed as-is, upcast in-kernel); only
    # non-float inputs get a wrapper cast.
    if not jnp.issubdtype(p.dtype, jnp.floating):
        p = p.astype(jnp.float32)
    if not jnp.issubdtype(l.dtype, jnp.floating):
        l = l.astype(jnp.float32)

    min_elems = _SUBLANES * _LANES  # 1024
    if n % _LANES != 0 or n < min_elems:
        # Fallback only for unaligned / tiny inputs: tiny pad, labels padded
        # with ignore_index so padded slots drop out of sum and count.
        n_pad = _round_up(max(n, min_elems), min_elems)
        p = jnp.pad(p, (0, n_pad - n), constant_values=0.0)
        l = jnp.pad(l, (0, n_pad - n), constant_values=float(ignore_index))

    rows = p.size // _LANES
    preds2d = p.reshape(rows, _LANES)     # zero-copy reshape on the fast path
    labels2d = l.reshape(rows, _LANES)

    # --- tiling -------------------------------------------------------------
    rows_per_slice = pl.cdiv(rows, _NUM_SLICES)
    if rows_per_slice <= _CHUNK_ROWS:
        tile_rows = _round_up(rows_per_slice, _SUBLANES)
        chunk_rows = tile_rows
    else:
        tile_rows = min(_MAX_TILE_ROWS, _round_up(rows_per_slice, _CHUNK_ROWS))
        chunk_rows = _CHUNK_ROWS

    tiles_total = pl.cdiv(rows, tile_rows)
    num_slices = _NUM_SLICES if tiles_total >= _NUM_SLICES else 1
    tiles_per_slice = pl.cdiv(tiles_total, num_slices)

    def in_index_map(s, t):
        # Clamp so no block starts past the array; the kernel's iota mask
        # (using the unclamped logical offset) zeroes duplicate steps.
        return (jnp.minimum(s * tiles_per_slice + t, tiles_total - 1), 0)

    def out_index_map(s, t):
        return (s, 0)

    kernel = functools.partial(
        _focal_partial_kernel,
        rows=rows,
        tiles_per_slice=tiles_per_slice,
        tile_rows=tile_rows,
        chunk_rows=chunk_rows,
        ignore_index=float(ignore_index),
    )

    sum_out, cnt_out = pl.pallas_call(
        kernel,
        out_shape=(
            jax.ShapeDtypeStruct((num_slices * _SUBLANES, _LANES), jnp.float32),
            jax.ShapeDtypeStruct((num_slices * _SUBLANES, _LANES), jnp.float32),
        ),
        grid_spec=pltpu.PrefetchScalarGridSpec(
            num_scalar_prefetch=0,
            grid=(num_slices, tiles_per_slice),
            in_specs=[
                pl.BlockSpec((tile_rows, _LANES), in_index_map),
                pl.BlockSpec((tile_rows, _LANES), in_index_map),
            ],
            out_specs=[
                pl.BlockSpec((_SUBLANES, _LANES), out_index_map),
                pl.BlockSpec((_SUBLANES, _LANES), out_index_map),
            ],
        ),
        compiler_params=pltpu.CompilerParams(
            dimension_semantics=("parallel", "arbitrary"),
            vmem_limit_bytes=48 << 20,  # 16 MiB double-buffered blocks + slack
        ),
    )(preds2d, labels2d)

    # Scalar focal epilogue in plain JAX (a handful of ops on (8/16,128) partials).
    total = jnp.sum(sum_out)
    count = jnp.sum(cnt_out)
    mean_bce = total / count          # BCEWithLogitsLoss default 'mean' reduction
    logpt = -mean_bce                 # NaN if every element is ignored (matches torch)
    pt = jnp.exp(logpt)
    return -((1.0 - pt) ** gamma) * alpha * logpt


if __name__ == "__main__":
    key = jax.random.PRNGKey(0)
    k1, k2, k3 = jax.random.split(key, 3)

    B, C, H, W = 2, 4, 16, 16
    preds = jax.random.normal(k1, (B, C, H, W), dtype=jnp.float32)

    # Binary labels in {0, 1}, with a sprinkle of ignore_index (255) entries.
    labels = (jax.random.uniform(k2, (B, C, H, W)) > 0.5).astype(jnp.float32)
    ignore_mask = jax.random.uniform(k3, (B, C, H, W)) < 0.1
    labels = jnp.where(ignore_mask, jnp.float32(IGNORE_INDEX), labels)

    loss = focal_loss(preds, labels)
    jax.block_until_ready(loss)

    # Pure-JAX reference check (same masked-mean BCE -> focal transform).
    m = labels != IGNORE_INDEX
    bce = jnp.maximum(preds, 0.0) - preds * labels + jnp.log1p(jnp.exp(-jnp.abs(preds)))
    mean_bce = jnp.sum(jnp.where(m, bce, 0.0)) / jnp.sum(m.astype(jnp.float32))
    logpt = -mean_bce
    pt = jnp.exp(logpt)
    ref = -((1.0 - pt) ** GAMMA) * ALPHA * logpt

    assert jnp.allclose(loss, ref, rtol=1e-5, atol=1e-6), (loss, ref)
    print("KERNEL_OK")
</pallas_src>

<mosaic_0001>
module attributes {stable_mosaic.version = 11 : i64} {
  func.func @_focal_partial_kernel(%arg0: i32, %arg1: i32, %arg2: memref<8x128xf32, #tpu.memory_space<vmem>>, %arg3: memref<8x128xf32, #tpu.memory_space<vmem>>, %arg4: memref<8x128xf32, #tpu.memory_space<vmem>>, %arg5: memref<8x128xf32, #tpu.memory_space<vmem>>) attributes {dimension_semantics = [#tpu.dimension_semantics<parallel>, #tpu.dimension_semantics<arbitrary>], iteration_bounds = array<i64: 2, 1>, scalar_prefetch = 0 : i64, scratch_operands = 0 : i64, tpu.core_type = #tpu.core_type<tc>, window_params = [{transform_indices = @transform_0, window_bounds = array<i64: 8, 128>}, {transform_indices = @transform_1, window_bounds = array<i64: 8, 128>}, {transform_indices = @transform_2, window_bounds = array<i64: 8, 128>}, {transform_indices = @transform_3, window_bounds = array<i64: 8, 128>}]} {
    %c0_i32 = arith.constant 0 : i32
    %0 = arith.cmpi eq, %arg1, %c0_i32 : i32
    %1 = arith.extui %0 : i1 to i32
    %c0_i32_0 = arith.constant 0 : i32
    %2 = arith.cmpi ne, %1, %c0_i32_0 : i32
    scf.if %2 {
      %cst_19 = arith.constant 0.000000e+00 : f32
      %49 = vector.broadcast %cst_19 : f32 to vector<8x128xf32>
      %c0_20 = arith.constant 0 : index
      %c0_21 = arith.constant 0 : index
      %50 = vector.load %arg4[%c0_20, %c0_21] : memref<8x128xf32, #tpu.memory_space<vmem>>, vector<8x128xf32>
      tpu.vector_store %arg4[%c0_20, %c0_21], %49 {strides = array<i32>} : memref<8x128xf32, #tpu.memory_space<vmem>>, vector<8x128xf32>,
      %cst_22 = arith.constant 0.000000e+00 : f32
      %51 = vector.broadcast %cst_22 : f32 to vector<8x128xf32>
      %c0_23 = arith.constant 0 : index
      %c0_24 = arith.constant 0 : index
      %52 = vector.load %arg5[%c0_23, %c0_24] : memref<8x128xf32, #tpu.memory_space<vmem>>, vector<8x128xf32>
      tpu.vector_store %arg5[%c0_23, %c0_24], %51 {strides = array<i32>} : memref<8x128xf32, #tpu.memory_space<vmem>>, vector<8x128xf32>,
    } else {
    }
    %c1_i32 = arith.constant 1 : i32
    %3 = arith.muli %arg0, %c1_i32 : i32
    %4 = arith.addi %3, %arg1 : i32
    %c8_i32 = arith.constant 8 : i32
    %5 = arith.muli %4, %c8_i32 : i32
    %cst = arith.constant 0.000000e+00 : f32
    %6 = vector.broadcast %cst : f32 to vector<8x128xf32>
    %c0_i32_1 = arith.constant 0 : i32
    %c8_i32_2 = arith.constant 8 : i32
    %7 = arith.muli %c0_i32_1, %c8_i32_2 : i32
    %8 = tpu.assume_multiple %7, 8 : i32
    %9 = arith.index_cast %8 : i32 to index
    %c0 = arith.constant 0 : index
    %10 = vector.load %arg2[%9, %c0] : memref<8x128xf32, #tpu.memory_space<vmem>>, vector<8x128xf32>
    %11 = arith.index_cast %8 : i32 to index
    %c0_3 = arith.constant 0 : index
    %12 = vector.load %arg3[%11, %c0_3] : memref<8x128xf32, #tpu.memory_space<vmem>>, vector<8x128xf32>
    %13 = tpu.iota {dimensions = array<i32: 0>} : vector<8x1xi32>
    %14 = arith.addi %5, %8 : i32
    %15 = vector.broadcast %14 : i32 to vector<8x1xi32>
    %16 = arith.addi %13, %15 : vector<8x1xi32>
    %c16_i32 = arith.constant 16 : i32
    %17 = vector.broadcast %c16_i32 : i32 to vector<8x1xi32>
    %18 = arith.cmpi slt, %16, %17 : vector<8x1xi32>
    %cst_4 = arith.constant 2.550000e+02 : f32
    %19 = vector.broadcast %cst_4 : f32 to vector<8x128xf32>
    %20 = arith.cmpf one, %12, %19 : vector<8x128xf32>
    %21 = vector.broadcast %18 : vector<8x1xi1> to vector<8x128xi1>
    %22 = arith.andi %21, %20 : vector<8x128xi1>
    %cst_5 = arith.constant 0.000000e+00 : f32
    %23 = vector.broadcast %cst_5 : f32 to vector<8x128xf32>
    %24 = arith.maximumf %10, %23 : vector<8x128xf32>
    %25 = arith.mulf %10, %12 : vector<8x128xf32>
    %26 = arith.subf %24, %25 : vector<8x128xf32>
    %27 = math.absf %10 : vector<8x128xf32>
    %cst_6 = arith.constant 0.000000e+00 : f32
    %28 = vector.broadcast %cst_6 : f32 to vector<8x128xf32>
    %29 = arith.subf %28, %27 : vector<8x128xf32>
    %30 = math.exp %29 : vector<8x128xf32>
    %31 = math.log1p %30 : vector<8x128xf32>
    %32 = arith.addf %26, %31 : vector<8x128xf32>
    %cst_7 = arith.constant 0.000000e+00 : f32
    %33 = vector.broadcast %cst_7 : f32 to vector<8x128xf32>
    %34 = arith.select %22, %32, %33 : vector<8x128xi1>, vector<8x128xf32>
    %35 = arith.extui %22 : vector<8x128xi1> to vector<8x128xi32>
    %36 = arith.sitofp %35 : vector<8x128xi32> to vector<8x128xf32>
    %37 = vector.shape_cast %34 : vector<8x128xf32> to vector<1x8x128xf32>
    %cst_8 = arith.constant dense<0.000000e+00> : vector<8x128xf32>
    %38 = vector.multi_reduction <add>, %37, %cst_8 [0] : vector<1x8x128xf32> to vector<8x128xf32>
    %39 = arith.addf %6, %38 : vector<8x128xf32>
    %40 = vector.shape_cast %36 : vector<8x128xf32> to vector<1x8x128xf32>
    %cst_9 = arith.constant dense<0.000000e+00> : vector<8x128xf32>
    %41 = vector.multi_reduction <add>, %40, %cst_9 [0] : vector<1x8x128xf32> to vector<8x128xf32>
    %42 = arith.addf %6, %41 : vector<8x128xf32>
    %c1_i32_10 = arith.constant 1 : i32
    %c0_11 = arith.constant 0 : index
    %c0_12 = arith.constant 0 : index
    %43 = vector.load %arg4[%c0_11, %c0_12] : memref<8x128xf32, #tpu.memory_space<vmem>>, vector<8x128xf32>
    %44 = arith.addf %43, %39 : vector<8x128xf32>
    %c0_13 = arith.constant 0 : index
    %c0_14 = arith.constant 0 : index
    %45 = vector.load %arg4[%c0_13, %c0_14] : memref<8x128xf32, #tpu.memory_space<vmem>>, vector<8x128xf32>
    tpu.vector_store %arg4[%c0_13, %c0_14], %44 {strides = array<i32>} : memref<8x128xf32, #tpu.memory_space<vmem>>, vector<8x128xf32>,
    %c0_15 = arith.constant 0 : index
    %c0_16 = arith.constant 0 : index
    %46 = vector.load %arg5[%c0_15, %c0_16] : memref<8x128xf32, #tpu.memory_space<vmem>>, vector<8x128xf32>
    %47 = arith.addf %46, %42 : vector<8x128xf32>
    %c0_17 = arith.constant 0 : index
    %c0_18 = arith.constant 0 : index
    %48 = vector.load %arg5[%c0_17, %c0_18] : memref<8x128xf32, #tpu.memory_space<vmem>>, vector<8x128xf32>
    tpu.vector_store %arg5[%c0_17, %c0_18], %47 {strides = array<i32>} : memref<8x128xf32, #tpu.memory_space<vmem>>, vector<8x128xf32>,
    return
  }
  func.func @transform_0(%arg0: i32, %arg1: i32) -> (i32, i32) {
    %c1_i32 = arith.constant 1 : i32
    %0 = arith.muli %arg0, %c1_i32 : i32
    %1 = arith.addi %0, %arg1 : i32
    %c1_i32_0 = arith.constant 1 : i32
    %2 = arith.minsi %1, %c1_i32_0 : i32
    %c0_i32 = arith.constant 0 : i32
    %c0_i32_1 = arith.constant 0 : i32
    return %2, %c0_i32 : i32, i32
  }
  func.func @transform_1(%arg0: i32, %arg1: i32) -> (i32, i32) {
    %c1_i32 = arith.constant 1 : i32
    %0 = arith.muli %arg0, %c1_i32 : i32
    %1 = arith.addi %0, %arg1 : i32
    %c1_i32_0 = arith.constant 1 : i32
    %2 = arith.minsi %1, %c1_i32_0 : i32
    %c0_i32 = arith.constant 0 : i32
    %c0_i32_1 = arith.constant 0 : i32
    return %2, %c0_i32 : i32, i32
  }
  func.func @transform_2(%arg0: i32, %arg1: i32) -> (i32, i32) {
    %c0_i32 = arith.constant 0 : i32
    %c0_i32_0 = arith.constant 0 : i32
    return %arg0, %c0_i32 : i32, i32
  }
  func.func @transform_3(%arg0: i32, %arg1: i32) -> (i32, i32) {
    %c0_i32 = arith.constant 0 : i32
    %c0_i32_0 = arith.constant 0 : i32
    return %arg0, %c0_i32 : i32, i32
  }
}

</mosaic_0001>

<bundles_post_ra>
// kernel: tpu_custom_call.1
= control target key start
LH: loop header
LB: loop body
LE: loop exit
PB: predicated region body
PF: predicated region fallthrough
CT: control target
= control target key end

     0   :  { %s1069_s0 = inlined_call_operand.hbm [shape: f32[16,128], index: 0, kind: input, shape index: {}]   ;;  %s1070_s1 = inlined_call_operand.hbm [shape: f32[16,128], index: 1, kind: input, shape index: {}]   ;;  %s1071_s2 = inlined_call_operand.hbm [shape: f32[16,128], index: 2, kind: output, shape index: {0}]   ;;  %s1072_s3 = inlined_call_operand.hbm [shape: f32[16,128], index: 3, kind: output, shape index: {1}]  }
   0x1   :  { %1074 = sst [smem:[#allocation15_spill]] %s1069_s0 }
   0x2   :  { %9 = vsyncpa [#allocation3], 0 }
   0x3   :  { %11 = vsyncpa [#allocation3 + $0x1], 0 }
   0x4   :  { %12 = vsyncpa [#allocation6], 0 }
   0x5   :  { %14 = vsyncpa [#allocation6 + $0x1], 0 }
   0x6   :  { %15 = vsyncpa [#allocation4], 0 }
   0x7   :  { %17 = vsyncpa [#allocation4 + $0x1], 0 }
   0x8   :  { %18 = vsyncpa [#allocation9], 0 }
   0x9   :  { %20 = vsyncpa [#allocation9 + $0x1], 0  ;;  %s828_s12 = smov 0   ;;  %s830_s13 = smov 0  }
   0xa   :  { %s832_s14 = smov 0   ;;  %s834_s15 = smov 0  }
   0xb   :  { %s836_s16 = smov 0   ;;  %s838_s17 = smov 0  }
   0xc   :  { %s840_s18 = smov 0   ;;  %s842_s19 = smov 0  }
   0xd   :  { %s844_s20 = smov 0  }
   0xe LB: > { %s485_s21 = sadd.s32 4294967295, %s801_s20   ;;  %s486_s22 = sadd.s32 4294967294, %s801_s20   ;;  %s801_s20 = sphi %s844_s20, %s26_s20   ;;  %s797_s19 = sphi %s842_s19, %s1094_s19   ;;  %s793_s18 = sphi %s840_s18, %s1093_s18   ;;  %s789_s17 = sphi %s838_s17, %s1092_s17   ;;  %s785_s16 = sphi %s836_s16, %s1091_s16   ;;  %s781_s15 = sphi %s834_s15, %s1090_s15   ;;  %s777_s14 = sphi %s832_s14, %s1089_s14   ;;  %s773_s13 = sphi %s830_s13, %s1088_s13   ;;  %s769_s12 = sphi %s828_s12, %s1087_s12  }
   0xf   : > { %s38_s23 = sadd.s32 1, %s797_s19  ;;  %p43_p0 = scmp.lt.s32.totalorder %s797_s19, 1 }
  0x10   : > { %p40_p1 = scmp.ge.s32.totalorder %s38_s23, 2  ;;  %s51_s24 = sadd.s32 1, %s789_s17 }
  0x11   : > { %s877_s25 = scalar_select %p43_p0, %s797_s19, 1 }
  0x12   : > { %s1096_s23 = smov (%p40_p1, %s38_s23), 0  ;;  %p58_p2 = scmp.ne.s32.totalorder %s789_s17, %s785_s16 }
  0x13   : > { %1075 = sst [smem:[#allocation14_spill]] %s1096_s23  ;;  %p59_p3 = scmp.eq.s32.totalorder %s801_s20, 0 }
  0x14   : > { %p46_p4 = scmp.lt.s32.totalorder %s1096_s23, 1  ;;  %p64_p5 = scmp.ne.s32.totalorder %s785_s16, %s781_s15 }
  0x15   : > { %p886_p6 = por %p59_p3, %p58_p2  ;;  %p65_p7 = scmp.eq.s32.totalorder %s485_s21, 0 }
  0x16   : > { %s47_s27 = scalar_select %p46_p4, %s1096_s23, 1 }
  0x17   : > { %p891_p8 = por %p65_p7, %p64_p5  ;;  %s106_s29 = ssub.s32 %s797_s19, %s1096_s23 }
  0x18   : > { %s48_s30 = ssub.s32 %s877_s25, %s47_s27  ;;  %p107_p9 = scmp.eq.s32.totalorder %s106_s29, 0 }
  0x19   : > { %p49_p10 = scmp.eq.s32.totalorder %s48_s30, 0  ;;  %s109_s4 = sadd.s32 1, %s777_s14 }
  0x1a   : > { %s900_s5 = scalar_select %p107_p9, %s777_s14, %s109_s4  }
  0x1b   : > { %s903_s6 = scalar_select %p49_p10, %s789_s17, %s51_s24  }
  0x1c   : > { %p119_p11 = scmp.ne.s32.totalorder %s777_s14, %s773_s13  ;;  %p120_p12 = scmp.eq.s32.totalorder %s485_s21, 1 }
  0x1d   : > { %p125_p13 = scmp.ne.s32.totalorder %s773_s13, %s769_s12  ;;  %p126_p0 = scmp.eq.s32.totalorder %s486_s22, 1 }
  0x1e   : > { %p909_p1 = por %p120_p12, %p119_p11  ;;  %p528_p4 = scmp.lt.s32.totalorder %s801_s20, 2 }
  0x1f   : > { %p914_p3 = por %p126_p0, %p125_p13  ;;  %s920_s9 = sand.u32 1, %s789_s17  }
  0x20   : > { %s490_s10 = sshll.u32 %s877_s25, 7  ;;  %s489_s11 = sshll.u32 %s920_s9, 3 }
  0x21   : > { %s1080_s0 = sld [smem:[#allocation15_spill]]  ;;  %s176_s24 = scalar_lea.vmem [#allocation2], %s489_s11 }
  0x22   : > { %s186_s27 = sshll.u32 %s176_s24, 4  ;;  %p929_p5 = pnand %p528_p4, %p886_p6  ;;  %s187_s27 = int_to_ptr.vmem [resolvable:$true] %s186_s27 }
  0x23   : > { %p493_p7 = scmp.ge.s32.totalorder %s801_s20, 1  ;;  %p212_p9 = scmp.lt.s32.totalorder %s801_s20, 3 }
  0x24   : > { %s173_s30 = scalar_lea.sflag [#allocation3], %s920_s9  ;;  %p609_p10 = pneg %p929_p5 }
  0x25   : > { %s620_s25 = scalar_lea.vmem %s187_s27, 128  ;;  %s803_s4 = smov [#allocation2]  }
  0x26   : > { %p621_p11 = scmp.ne.s32.totalorder %s187_s27, %s620_s25  ;;  %s625_s26 = sshll.u32 %s803_s4, 4  ;;  %s626_s26 = int_to_ptr.vmem [resolvable:$false] %s625_s26 }
  0x27   : > { %s184_s22 = scalar_lea.hbm %s1080_s0, %s490_s10  ;;  %s627_s15 = scalar_lea.vmem %s626_s26, 256 }
  0x28   : > { %p623_p12 = pnand %p621_p11, %p609_p10  ;;  %p628_p6 = scmp.lt.s32.totalorder %s187_s27, %s626_s26 }
  0x29   : > { %p629_p0 = scmp.lt.s32.totalorder %s627_s15, %s620_s25 }
  0x2a   : > { %p624_p13 = pneg %p623_p12 }
  0x2b   : > { %p630_p4 = por %p629_p0, %p628_p6 }
  0x2d   : > { %p631_p2 = pnand %p630_p4, %p624_p13 }
  0x2f   : > { %634 = shalt.err (!%p631_p2)
}
  0x30   : > { %517 = dma.hbm_to_vmem [thread:$0]  (!%p929_p5), %s184_s22, 128, %s187_s27, %s173_s30  }
  0x31   : > { %p947_p11 = pnand %p493_p7, %p212_p9  ;;  %s205_s25 = scalar_lea.hbm %s1070_s1, %s490_s10 }
  0x32   : > { %s197_s26 = scalar_lea.vmem [#allocation5], %s489_s11  ;;  %s194_s0 = scalar_lea.sflag [#allocation6], %s920_s9 }
  0x33   : > { %s207_s15 = sshll.u32 %s197_s26, 4  ;;  %s804_s22 = smov [#allocation5]   ;;  %s208_s15 = int_to_ptr.vmem [resolvable:$true] %s207_s15 }
  0x34   : > { %s648_s23 = scalar_lea.vmem %s208_s15, 128  ;;  %s653_s27 = sshll.u32 %s804_s22, 4  ;;  %s654_s27 = int_to_ptr.vmem [resolvable:$false] %s653_s27 }
  0x35   : > { %p649_p2 = scmp.ne.s32.totalorder %s208_s15, %s648_s23  ;;  %s655_s30 = scalar_lea.vmem %s654_s27, 256 }
  0x36   : > { %p656_p7 = scmp.lt.s32.totalorder %s208_s15, %s654_s27  ;;  %p657_p9 = scmp.lt.s32.totalorder %s655_s30, %s648_s23 }
  0x37   : > { %p651_p12 = pnand %p649_p2, %p609_p10 }
  0x38   : > { %p658_p6 = por %p657_p9, %p656_p7 }
  0x39   : > { %p652_p13 = pneg %p651_p12 }
  0x3b   : > { %p659_p0 = pnand %p658_p6, %p652_p13 }
  0x3d   : > { %662 = shalt.err (!%p659_p0)
}
  0x3e   : > { %520 = dma.hbm_to_vmem [thread:$0]  (!%p929_p5), %s205_s25, 128, %s208_s15, %s194_s0  }
  0x3f   : > { %216 = sbr.rel (%p947_p11) target bundleno = 131 (0x83), region = 28  ;;  %s218_s9 = sand.u32 (!%p947_p11), 1, %s785_s16  }
  0x40   : > { %s494_s10 = sshll.u32 (!%p947_p11), %s218_s9, 3  ;;  %s219_s11 = scalar_lea.sflag (!%p947_p11), [#allocation3], %s218_s9 }
  0x41   : > { %s222_s24 = scalar_lea.vmem (!%p947_p11), [#allocation2], %s494_s10 }
  0x44   : > { %752 = dma.done.wait (%p891_p8), %s219_s11, 128  }
  0x45   : > { %754 = vsyncadd (%p891_p8), %s219_s11, 4294967168  ;;  %s228_s23 = scalar_lea.sflag [#allocation6], %s218_s9  ;;  %s231_s4 = scalar_lea.vmem [#allocation5], %s494_s10 }
  0x46   : > { %756 = dma.done.wait (%p891_p8), %s228_s23, 128  }
  0x47   : > { %758 = vsyncadd (%p891_p8), %s228_s23, 4294967168  ;;  %s972_s0 = sand.u32 1, %s773_s13   ;;  %s498_s29 = sshll.u32 %s793_s18, 3  ;;  %v280_v0 = vlaneseq  ;;  %v278_v4 = vld [vmem:[%s222_s24] sm:$0xff]  ;;  %v279_v5 = vld [vmem:[%s231_s4] sm:$0xff]  ;;  %v805_v9 = vmov 0.0  }
  0x48   : > { %v283_v1 = vstv %s498_s29  ;;  %s496_s21 = sshll.u32 %s972_s0, 3  ;;  %vm286_vm1 = vcmp.ne.f32.partialorder %v279_v5, 255.0  ;;  %v293_v6 = vand.u32 2147483647, %v278_v4  ;;  %s502_s28 = sshll.u32 %s793_s18, 7 }
  0x49   : > { %v281_v2 = vshrl.u32 %v280_v0, 7  ;;  %s263_s25 = scalar_lea.vmem [#allocation8], %s496_s21  ;;  %s990_s27 = scalar_lea.hbm %s1072_s3, %s502_s28 }
  0x4a   : > { %s352_s26 = sshll.u32 %s263_s25, 4  ;;  %v294_v8 = vsub.f32 0.0, %v293_v6  ;;  %s326_s30 = scalar_lea.sflag [#allocation9], %s972_s0  ;;  %s992_s26 = int_to_ptr.vmem [resolvable:$true] %s352_s26 }
  0x4b   : > { %v284_v3 = vadd.s32 %v283_v1, %v281_v2  ;;  %s663_s9 = scalar_lea.vmem %s992_s26, 128  ;;  %s806_s10 = smov [#allocation8]  }
  0x4c   : > { %v295_v11 = vmul.f32 1.442695, %v294_v8  ;;  %p664_p8 = scmp.ne.s32.totalorder %s992_s26, %s663_s9  ;;  %s667_s11 = sshll.u32 %s806_s10, 4  ;;  %s668_s11 = int_to_ptr.vmem [resolvable:$false] %s667_s11 }
  0x4d   : > { %vm285_vm0 = vcmp.lt.s32.totalorder %v284_v3, 16  ;;  %s669_s24 = scalar_lea.vmem %s668_s11, 256  ;;  %p670_p4 = scmp.lt.s32.totalorder %s992_s26, %s668_s11 }
  0x4e   : > { %vm979_vm2 = vmand %vm285_vm0, %vm286_vm1  ;;  %603 = vpow2.f32 %v295_v11  ;;  %p665_p5 = pnand %p664_p8, %p909_p1  ;;  %p671_p11 = scmp.lt.s32.totalorder %s669_s24, %s663_s9 }
  0x4f   : > { %v499_v10 = vsel %vm979_vm2, 1.0, %v805_v9 }
  0x50   : > { %319 = vst [vmem:[%s263_s25] sm:$0xff] %v499_v10  ;;  %p666_p10 = pneg %p665_p5  ;;  %p672_p2 = por %p671_p11, %p670_p4 }
  0x52   : > { %p673_p12 = pnand %p672_p2, %p666_p10 }
  0x54   : > { %676 = shalt.err (!%p673_p12)
}
  0x55   : > { %s677_s23 = scalar_lea.hbm %s990_s27, 128  ;;  %s681_s25 = scalar_lea.hbm %s1072_s3, 256 }
  0x56   : > { %p678_p13 = scmp.ne.s32.totalorder %s990_s27, %s677_s23  ;;  %p682_p6 = scmp.lt.s32.totalorder %s990_s27, %s1072_s3 }
  0x57   : > { %p683_p0 = scmp.lt.s32.totalorder %s681_s25, %s677_s23 }
  0x58   : > { %p679_p7 = pnand %p678_p13, %p909_p1 }
  0x59   : > { %p684_p8 = por %p683_p0, %p682_p6 }
  0x5a   : > { %p680_p9 = pneg %p679_p7 }
  0x5c   : > { %p685_p5 = pnand %p684_p8, %p680_p9 }
  0x5e   : > { %688 = shalt.err (!%p685_p5)
}
  0x5f   : > { %511 = dma.vmem_to_hbm [thread:$0]  (%p909_p1), %s992_s26, 128, %s990_s27, %s326_s30   ;;  %v604_v12 = vpop.eup %603  ;;  %v290_v16 = vmax.f32 %v278_v4, 0.0  ;;  %v291_v17 = vmul.f32 %v279_v5, %v278_v4 }
  0x60   : > { %v297_v13 = vadd.f32 1.0, %v604_v12  ;;  %v300_v14 = vmul.f32 -0.5, %v604_v12  ;;  %v303_v18 = vand.u32 2147483647, %v604_v12  ;;  %s256_s26 = scalar_lea.vmem [#allocation7], %s496_s21  ;;  %s337_s10 = scalar_lea.hbm %s1071_s2, %s502_s28 }
  0x61   : > { %v292_v21 = vsub.f32 %v290_v16, %v291_v17  ;;  %s339_s27 = sshll.u32 %s256_s26, 4  ;;  %s321_s11 = scalar_lea.sflag [#allocation4], %s972_s0  ;;  %s340_s27 = int_to_ptr.vmem [resolvable:$true] %s339_s27 }
  0x62   : > { %605 = vlog2.f32 %v297_v13  ;;  %v301_v15 = vadd.f32 1.0, %v300_v14  ;;  %vm304_vm3 = vcmp.lt.f32.partialorder %v303_v18, 0.0004427343  ;;  %s689_s24 = scalar_lea.vmem %s340_s27, 128  ;;  %s807_s23 = smov [#allocation7]  }
  0x63   : > { %p690_p10 = scmp.ne.s32.totalorder %s340_s27, %s689_s24  ;;  %s693_s4 = sshll.u32 %s807_s23, 4  ;;  %s694_s4 = int_to_ptr.vmem [resolvable:$false] %s693_s4 }
  0x64   : > { %v302_v19 = vmul.f32 %v604_v12, %v301_v15  ;;  %s695_s21 = scalar_lea.vmem %s694_s4, 256  ;;  %p696_p2 = scmp.lt.s32.totalorder %s340_s27, %s694_s4 }
  0x65   : > { %p691_p4 = pnand %p690_p10, %p909_p1  ;;  %p697_p12 = scmp.lt.s32.totalorder %s695_s21, %s689_s24 }
  0x67   : > { %p692_p11 = pneg %p691_p4  ;;  %p698_p13 = por %p697_p12, %p696_p2 }
  0x69   : > { %p699_p7 = pnand %p698_p13, %p692_p11 }
  0x6f   : > { %v606_v20 = vpop.eup %605 }
  0x70   : > { %v299_v22 = vmul.f32 0.6931472, %v606_v20 }
  0x72   : > { %v305_v23 = vsel %vm304_vm3, %v302_v19, %v299_v22 }
  0x73   : > { %v306_v24 = vadd.f32 %v305_v23, %v292_v21 }
  0x75   : > { %v307_v25 = vsel %vm979_vm2, %v306_v24, 0.0 }
  0x76   : > { %316 = vst [vmem:[%s256_s26] sm:$0xff] %v307_v25 }
  0x77   : > { %702 = shalt.err (!%p699_p7)
}
  0x78   : > { %s703_s18 = scalar_lea.hbm %s337_s10, 128  ;;  %s707_s29 = scalar_lea.hbm %s1071_s2, 256 }
  0x79   : > { %p704_p9 = scmp.ne.s32.totalorder %s337_s10, %s703_s18  ;;  %p708_p8 = scmp.lt.s32.totalorder %s337_s10, %s1071_s2 }
  0x7a   : > { %p709_p5 = scmp.lt.s32.totalorder %s707_s29, %s703_s18 }
  0x7b   : > { %p705_p6 = pnand %p704_p9, %p909_p1 }
  0x7c   : > { %p710_p10 = por %p709_p5, %p708_p8 }
  0x7d   : > { %p706_p0 = pneg %p705_p6 }
  0x7f   : > { %p711_p4 = pnand %p710_p10, %p706_p0 }
  0x81   : > { %714 = shalt.err (!%p711_p4)
}
  0x82   : > { %510 = dma.vmem_to_hbm [thread:$0]  (%p909_p1), %s340_s27, 128, %s337_s10, %s321_s11  }
  0x83 PF: > { %s364_s22 = sand.u32 1, %s769_s12   ;;  %p1085_p11 = scmp.ge.s32.totalorder %s801_s20, 2 }
  0x84   : > { %s365_s26 = scalar_lea.sflag [#allocation4], %s364_s22 }
  0x85   : > { %p522_p2 = pnand %p1085_p11, %p914_p3 }
  0x87   : > { %p523_p12 = pneg %p522_p2 }
  0x89   : > { %760 = dma.done.wait (%p523_p12), %s365_s26, 128  }
  0x8a   : > { %762 = vsyncadd (%p523_p12), %s365_s26, 4294967168  ;;  %s374_s30 = scalar_lea.sflag [#allocation9], %s364_s22 }
  0x8b   : > { %764 = dma.done.wait (%p523_p12), %s374_s30, 128  }
  0x8c   : > { %766 = vsyncadd (%p523_p12), %s374_s30, 4294967168  ;;  %s26_s20 = sadd.s32 1, %s801_s20   ;;  %s1086_s7 = sld [smem:[#allocation14_spill]] }
  0x8d   : > { %p23_p13 = scmp.ge.s32.totalorder %s26_s20, 4   ;;  %s1087_s12 = smov %s773_s13 }
  0x8e   : > { %s1088_s13 = smov %s777_s14  ;;  %s1089_s14 = smov %s900_s5 }
  0x8f   : > { %s1090_s15 = smov %s785_s16  ;;  %s1091_s16 = smov %s789_s17 }
  0x90   : > { %s1092_s17 = smov %s903_s6  ;;  %s1093_s18 = smov %s797_s19 }
  0x91   :  { %25 = sbr.rel (!%p23_p13) target bundleno = 14 (0xe), region = 107 }
  0x92   : > { %s1094_s19 = smov %s1086_s7 }
  0x96   :  { %379 = vsyncpa [#allocation3], 1 }
  0x97   :  { %381 = vsyncpa [#allocation3 + $0x1], 1 }
  0x98   :  { %382 = vsyncpa [#allocation6], 1 }
  0x99   :  { %384 = vsyncpa [#allocation6 + $0x1], 1 }
  0x9a   :  { %385 = vsyncpa [#allocation4], 1 }
  0x9b   :  { %387 = vsyncpa [#allocation4 + $0x1], 1 }
  0x9c   :  { %388 = vsyncpa [#allocation9], 1 }
  0x9d   :  { %390 = vsyncpa [#allocation9 + $0x1], 1 }

</bundles_post_ra>
